<compile_context>
chip_gen: v7x
topology: tpu7x:2x2x1
jax: 0.10.0
libtpu: 0.0.40
codegen_flags: <defaults>
</compile_context>

<pallas_src>
import jax
import jax.numpy as jnp
from jax.experimental import pallas as pl
from jax.experimental.pallas import tpu as pltpu


def mlp_kernel(x_ref, w1_ref, b1_ref, w2_ref, b2_ref, w3_ref, b3_ref, o_ref):
    # x_ref: (2, TB)   feature-major, batch on lanes
    # w1: (16, 2)  b1: (16, 1)
    # w2: (16, 16) b2: (16, 1)
    # w3: (16, 1)  b3: (1, 1)
    # o_ref: (1, TB)
    w1 = w1_ref[...]
    b1 = b1_ref[...]
    w2 = w2_ref[...]
    b2 = b2_ref[...]
    w3 = w3_ref[...]
    b3 = b3_ref[...]

    x0 = x_ref[0:1, :]  # (1, TB)
    x1 = x_ref[1:2, :]  # (1, TB)

    # ---- layer 1: (16,2) @ (2,TB) as two broadcast FMAs on the VPU ----
    h1 = w1[:, 0:1] * x0 + w1[:, 1:2] * x1 + b1          # (16, TB)
    h1 = jnp.maximum(h1, 0.0)

    # ---- layer 2: (16,16) @ (16,TB) as 16 unrolled broadcast FMAs ----
    h2 = b2 + w2[:, 0:1] * h1[0:1, :]                    # (16, TB)
    for k in range(1, 16):
        h2 = h2 + w2[:, k : k + 1] * h1[k : k + 1, :]
    h2 = jnp.maximum(h2, 0.0)

    # ---- layer 3: (1,16) @ (16,TB) as 16 unrolled broadcast FMAs ----
    out = b3 + w3[0:1, :] * h2[0:1, :]                   # (1, TB)
    for k in range(1, 16):
        out = out + w3[k : k + 1, :] * h2[k : k + 1, :]

    o_ref[...] = out


def nonlinear_model_forward(x, params, *, tb=4096):
    """x: (B, 2) float32.  Returns (B, 1) float32."""
    B = x.shape[0]
    w1, b1, w2, b2, w3, b3 = (
        params["w1"], params["b1"], params["w2"],
        params["b2"], params["w3"], params["b3"],
    )

    # Batch tile: multiple of 128 (lane width), no larger than the padded batch.
    tb = max(128, min(tb, pl.cdiv(B, 128) * 128))
    padded_b = pl.cdiv(B, tb) * tb

    # Wrapper-side layout plumbing: feature-major (2, B_padded), batch on lanes.
    xt = jnp.transpose(x)  # (2, B)
    if padded_b != B:
        xt = jnp.pad(xt, ((0, 0), (0, padded_b - B)))

    grid = (padded_b // tb,)

    resident = lambda shape: pl.BlockSpec(shape, lambda i: (0, 0))

    out_t = pl.pallas_call(
        mlp_kernel,
        out_shape=jax.ShapeDtypeStruct((1, padded_b), jnp.float32),
        grid=grid,
        in_specs=[
            pl.BlockSpec((2, tb), lambda i: (0, i)),   # streamed x tiles
            resident(w1.shape),                        # weights stay VMEM-resident
            resident(b1.shape),
            resident(w2.shape),
            resident(b2.shape),
            resident(w3.shape),
            resident(b3.shape),
        ],
        out_specs=pl.BlockSpec((1, tb), lambda i: (0, i)),  # lane-dense output
        compiler_params=pltpu.CompilerParams(
            dimension_semantics=("parallel",),          # shard batch across TCs (v7x)
            vmem_limit_bytes=32 * 1024 * 1024,          # tile footprint << 1 MiB; safe on v5e/v6e/v7x
        ),
    )(xt, w1, b1, w2, b2, w3, b3)

    return jnp.transpose(out_t[:, :B])  # (B, 1)


def init_params(key):
    """Deterministic init mimicking nn.Linear default (uniform +-1/sqrt(fan_in)).

    Weights stored in PyTorch (out, in) layout for layers 1/2; layer-3 weight
    stored as a (16, 1) column; biases stored as (out, 1) columns.
    """
    def linear(k, fan_in, fan_out):
        kw, kb = jax.random.split(k)
        bound = 1.0 / (fan_in ** 0.5)
        w = jax.random.uniform(kw, (fan_out, fan_in), jnp.float32, -bound, bound)
        b = jax.random.uniform(kb, (fan_out, 1), jnp.float32, -bound, bound)
        return w, b

    k1, k2, k3 = jax.random.split(key, 3)
    w1, b1 = linear(k1, 2, 16)     # (16, 2), (16, 1)
    w2, b2 = linear(k2, 16, 16)    # (16, 16), (16, 1)
    w3, b3 = linear(k3, 16, 1)     # (1, 16), (1, 1)
    return {"w1": w1, "b1": b1, "w2": w2, "b2": b2, "w3": w3.T, "b3": b3}


def reference_forward(x, p):
    h1 = jnp.maximum(x @ p["w1"].T + p["b1"].T, 0.0)
    h2 = jnp.maximum(h1 @ p["w2"].T + p["b2"].T, 0.0)
    return h2 @ p["w3"] + p["b3"]


if __name__ == "__main__":
    key = jax.random.PRNGKey(0)
    kx, kp = jax.random.split(key)
    params = init_params(kp)

    # Multi-tile case: B=512 with tb=256 -> grid of 2 batch tiles.
    x = jax.random.normal(kx, (512, 2), jnp.float32)
    out = jax.block_until_ready(nonlinear_model_forward(x, params, tb=256))
    ref = reference_forward(x, params)
    assert out.shape == (512, 1)
    assert jnp.allclose(out, ref, atol=1e-5, rtol=1e-5), "mismatch vs reference (B=512)"

    # Small, non-128-multiple batch: exercises the padding path.
    x_small = jax.random.normal(kx, (8, 2), jnp.float32)
    out_small = jax.block_until_ready(nonlinear_model_forward(x_small, params))
    ref_small = reference_forward(x_small, params)
    assert out_small.shape == (8, 1)
    assert jnp.allclose(out_small, ref_small, atol=1e-5, rtol=1e-5), "mismatch vs reference (B=8)"

    print("KERNEL_OK")
</pallas_src>

<mosaic_0001>
module attributes {stable_mosaic.version = 11 : i64} {
  func.func @mlp_kernel(%arg0: i32, %arg1: memref<2x256xf32, #tpu.memory_space<vmem>>, %arg2: memref<16x2xf32, #tpu.memory_space<vmem>>, %arg3: memref<16x1xf32, #tpu.memory_space<vmem>>, %arg4: memref<16x16xf32, #tpu.memory_space<vmem>>, %arg5: memref<16x1xf32, #tpu.memory_space<vmem>>, %arg6: memref<16x1xf32, #tpu.memory_space<vmem>>, %arg7: memref<1x1xf32, #tpu.memory_space<vmem>>, %arg8: memref<1x256xf32, #tpu.memory_space<vmem>>) attributes {dimension_semantics = [#tpu.dimension_semantics<parallel>], iteration_bounds = array<i64: 2>, scalar_prefetch = 0 : i64, scratch_operands = 0 : i64, tpu.core_type = #tpu.core_type<tc>, window_params = [{transform_indices = @transform_0, window_bounds = array<i64: 2, 256>}, {pipeline_mode = #tpu.pipeline_mode<synchronous>, transform_indices = @transform_1, window_bounds = array<i64: 16, 2>}, {pipeline_mode = #tpu.pipeline_mode<synchronous>, transform_indices = @transform_2, window_bounds = array<i64: 16, 1>}, {pipeline_mode = #tpu.pipeline_mode<synchronous>, transform_indices = @transform_3, window_bounds = array<i64: 16, 16>}, {pipeline_mode = #tpu.pipeline_mode<synchronous>, transform_indices = @transform_4, window_bounds = array<i64: 16, 1>}, {pipeline_mode = #tpu.pipeline_mode<synchronous>, transform_indices = @transform_5, window_bounds = array<i64: 16, 1>}, {pipeline_mode = #tpu.pipeline_mode<synchronous>, transform_indices = @transform_6, window_bounds = array<i64: 1, 1>}, {transform_indices = @transform_7, window_bounds = array<i64: 1, 256>}]} {
    %c0 = arith.constant 0 : index
    %c0_0 = arith.constant 0 : index
    %0 = vector.load %arg2[%c0, %c0_0] : memref<16x2xf32, #tpu.memory_space<vmem>>, vector<16x2xf32>
    %c0_1 = arith.constant 0 : index
    %c0_2 = arith.constant 0 : index
    %1 = vector.load %arg3[%c0_1, %c0_2] : memref<16x1xf32, #tpu.memory_space<vmem>>, vector<16x1xf32>
    %c0_3 = arith.constant 0 : index
    %c0_4 = arith.constant 0 : index
    %2 = vector.load %arg4[%c0_3, %c0_4] : memref<16x16xf32, #tpu.memory_space<vmem>>, vector<16x16xf32>
    %c0_5 = arith.constant 0 : index
    %c0_6 = arith.constant 0 : index
    %3 = vector.load %arg5[%c0_5, %c0_6] : memref<16x1xf32, #tpu.memory_space<vmem>>, vector<16x1xf32>
    %c0_7 = arith.constant 0 : index
    %c0_8 = arith.constant 0 : index
    %4 = vector.load %arg6[%c0_7, %c0_8] : memref<16x1xf32, #tpu.memory_space<vmem>>, vector<16x1xf32>
    %c0_9 = arith.constant 0 : index
    %c0_10 = arith.constant 0 : index
    %5 = vector.load %arg7[%c0_9, %c0_10] : memref<1x1xf32, #tpu.memory_space<vmem>>, vector<1x1xf32>
    %c0_11 = arith.constant 0 : index
    %c0_12 = arith.constant 0 : index
    %6 = vector.load %arg1[%c0_11, %c0_12] : memref<2x256xf32, #tpu.memory_space<vmem>>, vector<1x256xf32>
    %c1 = arith.constant 1 : index
    %c0_13 = arith.constant 0 : index
    %7 = vector.load %arg1[%c1, %c0_13] : memref<2x256xf32, #tpu.memory_space<vmem>>, vector<1x256xf32>
    %8 = vector.extract_strided_slice %0 {offsets = [0, 0], sizes = [16, 1], strides = [1, 1]} : vector<16x2xf32> to vector<16x1xf32>
    %9 = vector.broadcast %8 : vector<16x1xf32> to vector<16x256xf32>
    %10 = vector.broadcast %6 : vector<1x256xf32> to vector<16x256xf32>
    %11 = arith.mulf %9, %10 : vector<16x256xf32>
    %12 = vector.extract_strided_slice %0 {offsets = [0, 1], sizes = [16, 1], strides = [1, 1]} : vector<16x2xf32> to vector<16x1xf32>
    %13 = vector.broadcast %12 : vector<16x1xf32> to vector<16x256xf32>
    %14 = vector.broadcast %7 : vector<1x256xf32> to vector<16x256xf32>
    %15 = arith.mulf %13, %14 : vector<16x256xf32>
    %16 = arith.addf %11, %15 : vector<16x256xf32>
    %17 = vector.broadcast %1 : vector<16x1xf32> to vector<16x256xf32>
    %18 = arith.addf %16, %17 : vector<16x256xf32>
    %cst = arith.constant 0.000000e+00 : f32
    %19 = vector.broadcast %cst : f32 to vector<16x256xf32>
    %20 = arith.maximumf %18, %19 : vector<16x256xf32>
    %21 = vector.extract_strided_slice %2 {offsets = [0, 0], sizes = [16, 1], strides = [1, 1]} : vector<16x16xf32> to vector<16x1xf32>
    %22 = vector.extract_strided_slice %20 {offsets = [0, 0], sizes = [1, 256], strides = [1, 1]} : vector<16x256xf32> to vector<1x256xf32>
    %23 = vector.broadcast %21 : vector<16x1xf32> to vector<16x256xf32>
    %24 = vector.broadcast %22 : vector<1x256xf32> to vector<16x256xf32>
    %25 = arith.mulf %23, %24 : vector<16x256xf32>
    %26 = vector.broadcast %3 : vector<16x1xf32> to vector<16x256xf32>
    %27 = arith.addf %26, %25 : vector<16x256xf32>
    %28 = vector.extract_strided_slice %2 {offsets = [0, 1], sizes = [16, 1], strides = [1, 1]} : vector<16x16xf32> to vector<16x1xf32>
    %29 = vector.extract_strided_slice %20 {offsets = [1, 0], sizes = [1, 256], strides = [1, 1]} : vector<16x256xf32> to vector<1x256xf32>
    %30 = vector.broadcast %28 : vector<16x1xf32> to vector<16x256xf32>
    %31 = vector.broadcast %29 : vector<1x256xf32> to vector<16x256xf32>
    %32 = arith.mulf %30, %31 : vector<16x256xf32>
    %33 = arith.addf %27, %32 : vector<16x256xf32>
    %34 = vector.extract_strided_slice %2 {offsets = [0, 2], sizes = [16, 1], strides = [1, 1]} : vector<16x16xf32> to vector<16x1xf32>
    %35 = vector.extract_strided_slice %20 {offsets = [2, 0], sizes = [1, 256], strides = [1, 1]} : vector<16x256xf32> to vector<1x256xf32>
    %36 = vector.broadcast %34 : vector<16x1xf32> to vector<16x256xf32>
    %37 = vector.broadcast %35 : vector<1x256xf32> to vector<16x256xf32>
    %38 = arith.mulf %36, %37 : vector<16x256xf32>
    %39 = arith.addf %33, %38 : vector<16x256xf32>
    %40 = vector.extract_strided_slice %2 {offsets = [0, 3], sizes = [16, 1], strides = [1, 1]} : vector<16x16xf32> to vector<16x1xf32>
    %41 = vector.extract_strided_slice %20 {offsets = [3, 0], sizes = [1, 256], strides = [1, 1]} : vector<16x256xf32> to vector<1x256xf32>
    %42 = vector.broadcast %40 : vector<16x1xf32> to vector<16x256xf32>
    %43 = vector.broadcast %41 : vector<1x256xf32> to vector<16x256xf32>
    %44 = arith.mulf %42, %43 : vector<16x256xf32>
    %45 = arith.addf %39, %44 : vector<16x256xf32>
    %46 = vector.extract_strided_slice %2 {offsets = [0, 4], sizes = [16, 1], strides = [1, 1]} : vector<16x16xf32> to vector<16x1xf32>
    %47 = vector.extract_strided_slice %20 {offsets = [4, 0], sizes = [1, 256], strides = [1, 1]} : vector<16x256xf32> to vector<1x256xf32>
    %48 = vector.broadcast %46 : vector<16x1xf32> to vector<16x256xf32>
    %49 = vector.broadcast %47 : vector<1x256xf32> to vector<16x256xf32>
    %50 = arith.mulf %48, %49 : vector<16x256xf32>
    %51 = arith.addf %45, %50 : vector<16x256xf32>
    %52 = vector.extract_strided_slice %2 {offsets = [0, 5], sizes = [16, 1], strides = [1, 1]} : vector<16x16xf32> to vector<16x1xf32>
    %53 = vector.extract_strided_slice %20 {offsets = [5, 0], sizes = [1, 256], strides = [1, 1]} : vector<16x256xf32> to vector<1x256xf32>
    %54 = vector.broadcast %52 : vector<16x1xf32> to vector<16x256xf32>
    %55 = vector.broadcast %53 : vector<1x256xf32> to vector<16x256xf32>
    %56 = arith.mulf %54, %55 : vector<16x256xf32>
    %57 = arith.addf %51, %56 : vector<16x256xf32>
    %58 = vector.extract_strided_slice %2 {offsets = [0, 6], sizes = [16, 1], strides = [1, 1]} : vector<16x16xf32> to vector<16x1xf32>
    %59 = vector.extract_strided_slice %20 {offsets = [6, 0], sizes = [1, 256], strides = [1, 1]} : vector<16x256xf32> to vector<1x256xf32>
    %60 = vector.broadcast %58 : vector<16x1xf32> to vector<16x256xf32>
    %61 = vector.broadcast %59 : vector<1x256xf32> to vector<16x256xf32>
    %62 = arith.mulf %60, %61 : vector<16x256xf32>
    %63 = arith.addf %57, %62 : vector<16x256xf32>
    %64 = vector.extract_strided_slice %2 {offsets = [0, 7], sizes = [16, 1], strides = [1, 1]} : vector<16x16xf32> to vector<16x1xf32>
    %65 = vector.extract_strided_slice %20 {offsets = [7, 0], sizes = [1, 256], strides = [1, 1]} : vector<16x256xf32> to vector<1x256xf32>
    %66 = vector.broadcast %64 : vector<16x1xf32> to vector<16x256xf32>
    %67 = vector.broadcast %65 : vector<1x256xf32> to vector<16x256xf32>
    %68 = arith.mulf %66, %67 : vector<16x256xf32>
    %69 = arith.addf %63, %68 : vector<16x256xf32>
    %70 = vector.extract_strided_slice %2 {offsets = [0, 8], sizes = [16, 1], strides = [1, 1]} : vector<16x16xf32> to vector<16x1xf32>
    %71 = vector.extract_strided_slice %20 {offsets = [8, 0], sizes = [1, 256], strides = [1, 1]} : vector<16x256xf32> to vector<1x256xf32>
    %72 = vector.broadcast %70 : vector<16x1xf32> to vector<16x256xf32>
    %73 = vector.broadcast %71 : vector<1x256xf32> to vector<16x256xf32>
    %74 = arith.mulf %72, %73 : vector<16x256xf32>
    %75 = arith.addf %69, %74 : vector<16x256xf32>
    %76 = vector.extract_strided_slice %2 {offsets = [0, 9], sizes = [16, 1], strides = [1, 1]} : vector<16x16xf32> to vector<16x1xf32>
    %77 = vector.extract_strided_slice %20 {offsets = [9, 0], sizes = [1, 256], strides = [1, 1]} : vector<16x256xf32> to vector<1x256xf32>
    %78 = vector.broadcast %76 : vector<16x1xf32> to vector<16x256xf32>
    %79 = vector.broadcast %77 : vector<1x256xf32> to vector<16x256xf32>
    %80 = arith.mulf %78, %79 : vector<16x256xf32>
    %81 = arith.addf %75, %80 : vector<16x256xf32>
    %82 = vector.extract_strided_slice %2 {offsets = [0, 10], sizes = [16, 1], strides = [1, 1]} : vector<16x16xf32> to vector<16x1xf32>
    %83 = vector.extract_strided_slice %20 {offsets = [10, 0], sizes = [1, 256], strides = [1, 1]} : vector<16x256xf32> to vector<1x256xf32>
    %84 = vector.broadcast %82 : vector<16x1xf32> to vector<16x256xf32>
    %85 = vector.broadcast %83 : vector<1x256xf32> to vector<16x256xf32>
    %86 = arith.mulf %84, %85 : vector<16x256xf32>
    %87 = arith.addf %81, %86 : vector<16x256xf32>
    %88 = vector.extract_strided_slice %2 {offsets = [0, 11], sizes = [16, 1], strides = [1, 1]} : vector<16x16xf32> to vector<16x1xf32>
    %89 = vector.extract_strided_slice %20 {offsets = [11, 0], sizes = [1, 256], strides = [1, 1]} : vector<16x256xf32> to vector<1x256xf32>
    %90 = vector.broadcast %88 : vector<16x1xf32> to vector<16x256xf32>
    %91 = vector.broadcast %89 : vector<1x256xf32> to vector<16x256xf32>
    %92 = arith.mulf %90, %91 : vector<16x256xf32>
    %93 = arith.addf %87, %92 : vector<16x256xf32>
    %94 = vector.extract_strided_slice %2 {offsets = [0, 12], sizes = [16, 1], strides = [1, 1]} : vector<16x16xf32> to vector<16x1xf32>
    %95 = vector.extract_strided_slice %20 {offsets = [12, 0], sizes = [1, 256], strides = [1, 1]} : vector<16x256xf32> to vector<1x256xf32>
    %96 = vector.broadcast %94 : vector<16x1xf32> to vector<16x256xf32>
    %97 = vector.broadcast %95 : vector<1x256xf32> to vector<16x256xf32>
    %98 = arith.mulf %96, %97 : vector<16x256xf32>
    %99 = arith.addf %93, %98 : vector<16x256xf32>
    %100 = vector.extract_strided_slice %2 {offsets = [0, 13], sizes = [16, 1], strides = [1, 1]} : vector<16x16xf32> to vector<16x1xf32>
    %101 = vector.extract_strided_slice %20 {offsets = [13, 0], sizes = [1, 256], strides = [1, 1]} : vector<16x256xf32> to vector<1x256xf32>
    %102 = vector.broadcast %100 : vector<16x1xf32> to vector<16x256xf32>
    %103 = vector.broadcast %101 : vector<1x256xf32> to vector<16x256xf32>
    %104 = arith.mulf %102, %103 : vector<16x256xf32>
    %105 = arith.addf %99, %104 : vector<16x256xf32>
    %106 = vector.extract_strided_slice %2 {offsets = [0, 14], sizes = [16, 1], strides = [1, 1]} : vector<16x16xf32> to vector<16x1xf32>
    %107 = vector.extract_strided_slice %20 {offsets = [14, 0], sizes = [1, 256], strides = [1, 1]} : vector<16x256xf32> to vector<1x256xf32>
    %108 = vector.broadcast %106 : vector<16x1xf32> to vector<16x256xf32>
    %109 = vector.broadcast %107 : vector<1x256xf32> to vector<16x256xf32>
    %110 = arith.mulf %108, %109 : vector<16x256xf32>
    %111 = arith.addf %105, %110 : vector<16x256xf32>
    %112 = vector.extract_strided_slice %2 {offsets = [0, 15], sizes = [16, 1], strides = [1, 1]} : vector<16x16xf32> to vector<16x1xf32>
    %113 = vector.extract_strided_slice %20 {offsets = [15, 0], sizes = [1, 256], strides = [1, 1]} : vector<16x256xf32> to vector<1x256xf32>
    %114 = vector.broadcast %112 : vector<16x1xf32> to vector<16x256xf32>
    %115 = vector.broadcast %113 : vector<1x256xf32> to vector<16x256xf32>
    %116 = arith.mulf %114, %115 : vector<16x256xf32>
    %117 = arith.addf %111, %116 : vector<16x256xf32>
    %cst_14 = arith.constant 0.000000e+00 : f32
    %118 = vector.broadcast %cst_14 : f32 to vector<16x256xf32>
    %119 = arith.maximumf %117, %118 : vector<16x256xf32>
    %120 = vector.extract_strided_slice %4 {offsets = [0, 0], sizes = [1, 1], strides = [1, 1]} : vector<16x1xf32> to vector<1x1xf32>
    %121 = vector.extract_strided_slice %119 {offsets = [0, 0], sizes = [1, 256], strides = [1, 1]} : vector<16x256xf32> to vector<1x256xf32>
    %122 = vector.broadcast %120 : vector<1x1xf32> to vector<1x256xf32>
    %123 = arith.mulf %122, %121 : vector<1x256xf32>
    %124 = vector.broadcast %5 : vector<1x1xf32> to vector<1x256xf32>
    %125 = arith.addf %124, %123 : vector<1x256xf32>
    %126 = vector.extract_strided_slice %4 {offsets = [1, 0], sizes = [1, 1], strides = [1, 1]} : vector<16x1xf32> to vector<1x1xf32>
    %127 = vector.extract_strided_slice %119 {offsets = [1, 0], sizes = [1, 256], strides = [1, 1]} : vector<16x256xf32> to vector<1x256xf32>
    %128 = vector.broadcast %126 : vector<1x1xf32> to vector<1x256xf32>
    %129 = arith.mulf %128, %127 : vector<1x256xf32>
    %130 = arith.addf %125, %129 : vector<1x256xf32>
    %131 = vector.extract_strided_slice %4 {offsets = [2, 0], sizes = [1, 1], strides = [1, 1]} : vector<16x1xf32> to vector<1x1xf32>
    %132 = vector.extract_strided_slice %119 {offsets = [2, 0], sizes = [1, 256], strides = [1, 1]} : vector<16x256xf32> to vector<1x256xf32>
    %133 = vector.broadcast %131 : vector<1x1xf32> to vector<1x256xf32>
    %134 = arith.mulf %133, %132 : vector<1x256xf32>
    %135 = arith.addf %130, %134 : vector<1x256xf32>
    %136 = vector.extract_strided_slice %4 {offsets = [3, 0], sizes = [1, 1], strides = [1, 1]} : vector<16x1xf32> to vector<1x1xf32>
    %137 = vector.extract_strided_slice %119 {offsets = [3, 0], sizes = [1, 256], strides = [1, 1]} : vector<16x256xf32> to vector<1x256xf32>
    %138 = vector.broadcast %136 : vector<1x1xf32> to vector<1x256xf32>
    %139 = arith.mulf %138, %137 : vector<1x256xf32>
    %140 = arith.addf %135, %139 : vector<1x256xf32>
    %141 = vector.extract_strided_slice %4 {offsets = [4, 0], sizes = [1, 1], strides = [1, 1]} : vector<16x1xf32> to vector<1x1xf32>
    %142 = vector.extract_strided_slice %119 {offsets = [4, 0], sizes = [1, 256], strides = [1, 1]} : vector<16x256xf32> to vector<1x256xf32>
    %143 = vector.broadcast %141 : vector<1x1xf32> to vector<1x256xf32>
    %144 = arith.mulf %143, %142 : vector<1x256xf32>
    %145 = arith.addf %140, %144 : vector<1x256xf32>
    %146 = vector.extract_strided_slice %4 {offsets = [5, 0], sizes = [1, 1], strides = [1, 1]} : vector<16x1xf32> to vector<1x1xf32>
    %147 = vector.extract_strided_slice %119 {offsets = [5, 0], sizes = [1, 256], strides = [1, 1]} : vector<16x256xf32> to vector<1x256xf32>
    %148 = vector.broadcast %146 : vector<1x1xf32> to vector<1x256xf32>
    %149 = arith.mulf %148, %147 : vector<1x256xf32>
    %150 = arith.addf %145, %149 : vector<1x256xf32>
    %151 = vector.extract_strided_slice %4 {offsets = [6, 0], sizes = [1, 1], strides = [1, 1]} : vector<16x1xf32> to vector<1x1xf32>
    %152 = vector.extract_strided_slice %119 {offsets = [6, 0], sizes = [1, 256], strides = [1, 1]} : vector<16x256xf32> to vector<1x256xf32>
    %153 = vector.broadcast %151 : vector<1x1xf32> to vector<1x256xf32>
    %154 = arith.mulf %153, %152 : vector<1x256xf32>
    %155 = arith.addf %150, %154 : vector<1x256xf32>
    %156 = vector.extract_strided_slice %4 {offsets = [7, 0], sizes = [1, 1], strides = [1, 1]} : vector<16x1xf32> to vector<1x1xf32>
    %157 = vector.extract_strided_slice %119 {offsets = [7, 0], sizes = [1, 256], strides = [1, 1]} : vector<16x256xf32> to vector<1x256xf32>
    %158 = vector.broadcast %156 : vector<1x1xf32> to vector<1x256xf32>
    %159 = arith.mulf %158, %157 : vector<1x256xf32>
    %160 = arith.addf %155, %159 : vector<1x256xf32>
    %161 = vector.extract_strided_slice %4 {offsets = [8, 0], sizes = [1, 1], strides = [1, 1]} : vector<16x1xf32> to vector<1x1xf32>
    %162 = vector.extract_strided_slice %119 {offsets = [8, 0], sizes = [1, 256], strides = [1, 1]} : vector<16x256xf32> to vector<1x256xf32>
    %163 = vector.broadcast %161 : vector<1x1xf32> to vector<1x256xf32>
    %164 = arith.mulf %163, %162 : vector<1x256xf32>
    %165 = arith.addf %160, %164 : vector<1x256xf32>
    %166 = vector.extract_strided_slice %4 {offsets = [9, 0], sizes = [1, 1], strides = [1, 1]} : vector<16x1xf32> to vector<1x1xf32>
    %167 = vector.extract_strided_slice %119 {offsets = [9, 0], sizes = [1, 256], strides = [1, 1]} : vector<16x256xf32> to vector<1x256xf32>
    %168 = vector.broadcast %166 : vector<1x1xf32> to vector<1x256xf32>
    %169 = arith.mulf %168, %167 : vector<1x256xf32>
    %170 = arith.addf %165, %169 : vector<1x256xf32>
    %171 = vector.extract_strided_slice %4 {offsets = [10, 0], sizes = [1, 1], strides = [1, 1]} : vector<16x1xf32> to vector<1x1xf32>
    %172 = vector.extract_strided_slice %119 {offsets = [10, 0], sizes = [1, 256], strides = [1, 1]} : vector<16x256xf32> to vector<1x256xf32>
    %173 = vector.broadcast %171 : vector<1x1xf32> to vector<1x256xf32>
    %174 = arith.mulf %173, %172 : vector<1x256xf32>
    %175 = arith.addf %170, %174 : vector<1x256xf32>
    %176 = vector.extract_strided_slice %4 {offsets = [11, 0], sizes = [1, 1], strides = [1, 1]} : vector<16x1xf32> to vector<1x1xf32>
    %177 = vector.extract_strided_slice %119 {offsets = [11, 0], sizes = [1, 256], strides = [1, 1]} : vector<16x256xf32> to vector<1x256xf32>
    %178 = vector.broadcast %176 : vector<1x1xf32> to vector<1x256xf32>
    %179 = arith.mulf %178, %177 : vector<1x256xf32>
    %180 = arith.addf %175, %179 : vector<1x256xf32>
    %181 = vector.extract_strided_slice %4 {offsets = [12, 0], sizes = [1, 1], strides = [1, 1]} : vector<16x1xf32> to vector<1x1xf32>
    %182 = vector.extract_strided_slice %119 {offsets = [12, 0], sizes = [1, 256], strides = [1, 1]} : vector<16x256xf32> to vector<1x256xf32>
    %183 = vector.broadcast %181 : vector<1x1xf32> to vector<1x256xf32>
    %184 = arith.mulf %183, %182 : vector<1x256xf32>
    %185 = arith.addf %180, %184 : vector<1x256xf32>
    %186 = vector.extract_strided_slice %4 {offsets = [13, 0], sizes = [1, 1], strides = [1, 1]} : vector<16x1xf32> to vector<1x1xf32>
    %187 = vector.extract_strided_slice %119 {offsets = [13, 0], sizes = [1, 256], strides = [1, 1]} : vector<16x256xf32> to vector<1x256xf32>
    %188 = vector.broadcast %186 : vector<1x1xf32> to vector<1x256xf32>
    %189 = arith.mulf %188, %187 : vector<1x256xf32>
    %190 = arith.addf %185, %189 : vector<1x256xf32>
    %191 = vector.extract_strided_slice %4 {offsets = [14, 0], sizes = [1, 1], strides = [1, 1]} : vector<16x1xf32> to vector<1x1xf32>
    %192 = vector.extract_strided_slice %119 {offsets = [14, 0], sizes = [1, 256], strides = [1, 1]} : vector<16x256xf32> to vector<1x256xf32>
    %193 = vector.broadcast %191 : vector<1x1xf32> to vector<1x256xf32>
    %194 = arith.mulf %193, %192 : vector<1x256xf32>
    %195 = arith.addf %190, %194 : vector<1x256xf32>
    %196 = vector.extract_strided_slice %4 {offsets = [15, 0], sizes = [1, 1], strides = [1, 1]} : vector<16x1xf32> to vector<1x1xf32>
    %197 = vector.extract_strided_slice %119 {offsets = [15, 0], sizes = [1, 256], strides = [1, 1]} : vector<16x256xf32> to vector<1x256xf32>
    %198 = vector.broadcast %196 : vector<1x1xf32> to vector<1x256xf32>
    %199 = arith.mulf %198, %197 : vector<1x256xf32>
    %200 = arith.addf %195, %199 : vector<1x256xf32>
    %c0_15 = arith.constant 0 : index
    %c0_16 = arith.constant 0 : index
    %201 = vector.load %arg8[%c0_15, %c0_16] : memref<1x256xf32, #tpu.memory_space<vmem>>, vector<1x256xf32>
    tpu.vector_store %arg8[%c0_15, %c0_16], %200 {strides = array<i32>} : memref<1x256xf32, #tpu.memory_space<vmem>>, vector<1x256xf32>,
    return
  }
  func.func @transform_0(%arg0: i32) -> (i32, i32) {
    %c0_i32 = arith.constant 0 : i32
    %c0_i32_0 = arith.constant 0 : i32
    return %c0_i32, %arg0 : i32, i32
  }
  func.func @transform_1(%arg0: i32) -> (i32, i32) {
    %c0_i32 = arith.constant 0 : i32
    %c0_i32_0 = arith.constant 0 : i32
    %c0_i32_1 = arith.constant 0 : i32
    return %c0_i32, %c0_i32_0 : i32, i32
  }
  func.func @transform_2(%arg0: i32) -> (i32, i32) {
    %c0_i32 = arith.constant 0 : i32
    %c0_i32_0 = arith.constant 0 : i32
    %c0_i32_1 = arith.constant 0 : i32
    return %c0_i32, %c0_i32_0 : i32, i32
  }
  func.func @transform_3(%arg0: i32) -> (i32, i32) {
    %c0_i32 = arith.constant 0 : i32
    %c0_i32_0 = arith.constant 0 : i32
    %c0_i32_1 = arith.constant 0 : i32
    return %c0_i32, %c0_i32_0 : i32, i32
  }
  func.func @transform_4(%arg0: i32) -> (i32, i32) {
    %c0_i32 = arith.constant 0 : i32
    %c0_i32_0 = arith.constant 0 : i32
    %c0_i32_1 = arith.constant 0 : i32
    return %c0_i32, %c0_i32_0 : i32, i32
  }
  func.func @transform_5(%arg0: i32) -> (i32, i32) {
    %c0_i32 = arith.constant 0 : i32
    %c0_i32_0 = arith.constant 0 : i32
    %c0_i32_1 = arith.constant 0 : i32
    return %c0_i32, %c0_i32_0 : i32, i32
  }
  func.func @transform_6(%arg0: i32) -> (i32, i32) {
    %c0_i32 = arith.constant 0 : i32
    %c0_i32_0 = arith.constant 0 : i32
    %c0_i32_1 = arith.constant 0 : i32
    return %c0_i32, %c0_i32_0 : i32, i32
  }
  func.func @transform_7(%arg0: i32) -> (i32, i32) {
    %c0_i32 = arith.constant 0 : i32
    %c0_i32_0 = arith.constant 0 : i32
    return %c0_i32, %arg0 : i32, i32
  }
}

</mosaic_0001>

<bundles_post_ra>
// kernel: tpu_custom_call.1
= control target key start
LH: loop header
LB: loop body
LE: loop exit
PB: predicated region body
PF: predicated region fallthrough
CT: control target
= control target key end

     0   :  { %s1655_s0 = inlined_call_operand.vmem [shape: f32[2,512], index: 0, kind: input, shape index: {}]   ;;  %s1656_s1 = inlined_call_operand.vmem [shape: f32[16,2], index: 1, kind: input, shape index: {}]   ;;  %s1657_s2 = inlined_call_operand.vmem [shape: f32[16,1], index: 2, kind: input, shape index: {}]   ;;  %s1658_s3 = inlined_call_operand.vmem [shape: f32[16,16], index: 3, kind: input, shape index: {}]   ;;  %s1659_s4 = inlined_call_operand.vmem [shape: f32[16,1], index: 4, kind: input, shape index: {}]   ;;  %s1660_s5 = inlined_call_operand.vmem [shape: f32[16,1], index: 5, kind: input, shape index: {}]   ;;  %s1661_s6 = inlined_call_operand.<no memory space> [shape: f32[1,1], index: 6, kind: input, shape index: {}]   ;;  %s1662_s7 = inlined_call_operand.hbm [shape: f32[1,512], index: 7, kind: output, shape index: {}]  }
   0x1   :  { %v12_v0 = vstv %s1661_s6 }
   0x2   :  { %13 = vst [vmem:[#allocation2] sm:$0x1] %v12_v0 }
   0x3   :  { %14 = vsyncpa [#allocation4], 0 }
   0x4   :  { %16 = vsyncpa [#allocation4 + $0x1], 0  ;;  %s1210_s26 = smov 0   ;;  %s1212_s27 = smov 0  }
   0x5   :  { %s1214_s28 = smov 0   ;;  %s1216_s29 = smov 0  }
   0x6 LB: > { %s1231_s6 = sadd.s32 4294967295, %s1147_s29   ;;  %s978_s30 = sadd.s32 4294967294, %s1147_s29   ;;  %s1147_s29 = sphi %s1216_s29, %s1668_s29   ;;  %s1143_s28 = sphi %s1214_s28, %s1667_s28   ;;  %s1139_s27 = sphi %s1212_s27, %s1666_s27   ;;  %s1135_s26 = sphi %s1210_s26, %s1665_s26  }
   0x7   : > { %s1235_s8 = sadd.s32 1, %s1147_s29   ;;  %s181_s9 = sadd.s32 1, %s1143_s28 }
   0x8   : > { %s178_s10 = ssub.s32 %s1147_s29, %s1235_s8  ;;  %p191_p0 = scmp.ne.s32.totalorder %s1143_s28, %s1139_s27 }
   0x9   : > { %p179_p1 = scmp.eq.s32.totalorder %s178_s10, 0  ;;  %p192_p2 = scmp.eq.s32.totalorder %s1231_s6, 1 }
   0xa   : > { %p197_p3 = scmp.ne.s32.totalorder %s1139_s27, %s1135_s26  ;;  %p198_p4 = scmp.eq.s32.totalorder %s978_s30, 1 }
   0xb   : > { %s1246_s11 = scalar_select %p179_p1, %s1143_s28, %s181_s9  }
   0xc   : > { %p1248_p5 = por %p192_p2, %p191_p0  ;;  %p1252_p6 = por %p198_p4, %p197_p3 }
   0xd   : > { %p981_p7 = scmp.ge.s32.totalorder %s1147_s29, 1  ;;  %p243_p8 = scmp.lt.s32.totalorder %s1147_s29, 3 }
   0xf   : > { %p244_p9 = pnand %p981_p7, %p243_p8 }
  0x10   : > { %v282_v1 = vld [vmem:[%s1656_s1] sm:$0xff] (!%p244_p9)  ;;  %v1149_v2 = vmov (!%p244_p9), 1   ;;  %v1150_v3 = vmov (!%p244_p9), 0   ;;  %v283_v4 = vld [vmem:[%s1656_s1 + $0x8] sm:$0xff] (!%p244_p9)  ;;  %v1151_v10 = vmov (!%p244_p9), 2   ;;  %v1152_v11 = vmov (!%p244_p9), 3  }
  0x11   : > { %247 = sbr.rel (%p244_p9) target bundleno = 312 (0x138), region = 48  ;;  %1049 = vset.pattern.permute.xlu1 (!%p244_p9), %v1149_v2  ;;  %1048 = vset.pattern.permute.xlu0 (!%p244_p9), %v1150_v3  ;;  %v284_v5 = vld [vmem:[%s1657_s2] sm:$0xff] (!%p244_p9)  ;;  %v285_v6 = vld [vmem:[%s1657_s2 + $0x8] sm:$0xff] (!%p244_p9)  ;;  %v1153_v12 = vmov (!%p244_p9), 5   ;;  %v1154_v13 = vmov (!%p244_p9), 4   ;;  %v1155_v14 = vmov (!%p244_p9), 8   ;;  %v307_v32 = vlaneseq (!%p244_p9) }
  0x12   : > { %322 = vperm.xlu1 (!%p244_p9), %1049, %v282_v1   ;;  %298 = vperm.xlu0 (!%p244_p9), %1048, %v282_v1   ;;  %v1275_v7 = vld [vmem:[%s1658_s3] sm:$0xff] (!%p244_p9)  ;;  %v1280_v8 = vld [vmem:[%s1658_s3 + $0x8] sm:$0xff] (!%p244_p9)  ;;  %v1156_v15 = vmov (!%p244_p9), 6   ;;  %v1157_v16 = vmov (!%p244_p9), 9   ;;  %v1158_v17 = vmov (!%p244_p9), 7   ;;  %v1159_v19 = vmov (!%p244_p9), 12  }
  0x13   : > { %v288_v9 = vld [vmem:[%s1659_s4] sm:$0xff] (!%p244_p9)  ;;  %v289_v18 = vld [vmem:[%s1659_s4 + $0x8] sm:$0xff] (!%p244_p9)  ;;  %v1160_v20 = vmov (!%p244_p9), 15   ;;  %v1161_v21 = vmov (!%p244_p9), 10   ;;  %v1162_v22 = vmov (!%p244_p9), 11   ;;  %v1163_v23 = vmov (!%p244_p9), 14  }
  0x14   : > { %v1164_v24 = vmov (!%p244_p9), 13   ;;  %v290_v25 = vld [vmem:[%s1660_s5] sm:$0xff] (!%p244_p9)  ;;  %v291_v27 = vld [vmem:[%s1660_s5 + $0x8] sm:$0xff] (!%p244_p9)  ;;  %s983_s19 = sshll.u32 (!%p244_p9), %s1231_s6, 1  ;;  %v1336_v34 = vshrl.u32 (!%p244_p9), %v307_v32, 7  ;;  %s272_s24 = sand.u32 (!%p244_p9), 1, %s1139_s27  }
  0x15   : > { %v292_v26 = vld [vmem:[#allocation2] sm:$0x1] (!%p244_p9)  ;;  %p276_p10 = scmp.lt.s32.totalorder (!%p244_p9), %s983_s19, 3  ;;  %s982_s25 = sshll.u32 (!%p244_p9), %s272_s24, 1  ;;  %vm901_vm0 = vcmp.lt.s32.totalorder (!%p244_p9), %v307_v32, 256 }
  0x16   : > { %326 = vperm.xlu1 (!%p244_p9), %1049, %v283_v4   ;;  %303 = vperm.xlu0 (!%p244_p9), %1048, %v283_v4   ;;  %v1342_v37 = vsub.s32 (!%p244_p9), 0, %v1336_v34  ;;  %v1345_v38 = vsub.s32 (!%p244_p9), 1, %v1336_v34  ;;  %s991_s30 = sshll.u32 (!%p244_p9), %s1231_s6, 5  ;;  %s274_s9 = scalar_lea.vmem (!%p244_p9), [#allocation3], %s982_s25 }
  0x17   : > { %s919_s10 = sshll.u32 (!%p244_p9), %s274_s9, 4  ;;  %s1613_s16 = scalar_lea.hbm (!%p244_p9), %s1662_s7, %s991_s30  ;;  %s1615_s10 = int_to_ptr.vmem [resolvable:$true] %s919_s10 }
  0x18   : > { %s1670_s19 = smov (!%p276_p10, %s983_s19), 3  ;;  %s905_s17 = scalar_lea.sflag [#allocation4], %s272_s24 }
  0x19   : > { %s984_s20 = sshll.u32 %s1670_s19, 1  ;;  %s1085_s18 = scalar_lea.vmem %s1615_s10, 32 }
  0x1a   : > { %1050 = vset.pattern.permute.xlu1 %v1150_v3  ;;  %350 = vperm.xlu0 %1048, %v284_v5   ;;  %s279_s23 = scalar_lea.vmem %s1655_s0, %s984_s20  ;;  %p1086_p11 = scmp.ne.s32.totalorder %s1615_s10, %s1085_s18 }
  0x1b   : > { %355 = vperm.xlu1 %1050, %v285_v6   ;;  %v985_v39 = vld [vmem:[%s279_s23 + $0x1] ss:$2 sm:$0x3]  ;;  %v293_v40 = vld [vmem:[%s279_s23] ss:$2 sm:$0x3] }
  0x1c   : > { %v333_v41 = vrot.slane %v985_v39, %v1342_v37  ;;  %v337_v42 = vrot.slane %v985_v39, %v1345_v38  ;;  %v310_v43 = vrot.slane %v293_v40, %v1342_v37  ;;  %v314_v44 = vrot.slane %v293_v40, %v1345_v38  ;;  %p1087_p12 = pnand %p1086_p11, %p1248_p5  ;;  %s1166_s6 = smov [#allocation3]  }
  0x1d   : > { %s1089_s19 = sshll.u32 %s1166_s6, 4  ;;  %s1090_s19 = int_to_ptr.vmem [resolvable:$false] %s1089_s19 }
  0x1e   : > { %368 = vperm.xlu0 %1048, %v1275_v7   ;;  %p1088_p13 = pneg %p1087_p12  ;;  %s1091_s20 = scalar_lea.vmem %s1090_s19, 64 }
  0x1f   : > { %373 = vperm.xlu1 %1050, %v1280_v8   ;;  %p1092_p0 = scmp.lt.s32.totalorder %s1615_s10, %s1090_s19  ;;  %p1093_p1 = scmp.lt.s32.totalorder %s1091_s20, %s1085_s18 }
  0x21   : > { %p1094_p2 = por %p1093_p1, %p1092_p0 }
  0x22   : > { %390 = vperm.xlu0 %1048, %v288_v9  }
  0x23   : > { %1051 = vset.pattern.permute.xlu1 %v1149_v2  ;;  %p1095_p3 = pnand %p1094_p2, %p1088_p13 }
  0x24   : > { %403 = vperm.xlu1 %1051, %v1275_v7  }
  0x26   : > { %1052 = vset.pattern.permute.xlu0 %v1151_v10 }
  0x27   : > { %427 = vperm.xlu0 %1052, %v1275_v7  }
  0x28   : > { %1053 = vset.pattern.permute.xlu1 %v1152_v11 }
  0x29   : > { %451 = vperm.xlu1 %1053, %v1275_v7  }
  0x2b   : > { %1055 = vset.pattern.permute.xlu0 %v1153_v12 }
  0x2c   : > { %499 = vperm.xlu0 %1055, %v1275_v7  }
  0x2d   : > { %1054 = vset.pattern.permute.xlu1 %v1154_v13 }
  0x2e   : > { %475 = vperm.xlu1 %1054, %v1275_v7  }
  0x30   : > { %1058 = vset.pattern.permute.xlu0 %v1155_v14 }
  0x31   : > { %571 = vperm.xlu0 %1058, %v1275_v7  }
  0x32   : > { %1056 = vset.pattern.permute.xlu1 %v1156_v15 }
  0x33   : > { %523 = vperm.xlu1 %1056, %v1275_v7  }
  0x35   : > { %1061 = vset.pattern.permute.xlu0 %v1157_v16 }
  0x36   : > { %595 = vperm.xlu0 %1061, %v1275_v7  }
  0x37   : > { %1057 = vset.pattern.permute.xlu1 %v1158_v17 }
  0x38   : > { %547 = vperm.xlu1 %1057, %v1275_v7  }
  0x3a   : > { %1064 = vset.pattern.permute.xlu0 %v1152_v11 }
  0x3b   : > { %455 = vperm.xlu0 %1064, %v1280_v8  }
  0x3c   : > { %1059 = vset.pattern.permute.xlu1 %v1150_v3 }
  0x3d   : > { %395 = vperm.xlu1 %1059, %v289_v18  }
  0x3f   : > { %1067 = vset.pattern.permute.xlu0 %v1159_v19 }
  0x40   : > { %667 = vperm.xlu0 %1067, %v1275_v7  }
  0x41   : > { %1060 = vset.pattern.permute.xlu1 %v1149_v2  ;;  %v1366_v2 = vsub.s32 2, %v1336_v34 }
  0x42   : > { %407 = vperm.xlu1 %1060, %v1280_v8  }
  0x44   : > { %1070 = vset.pattern.permute.xlu0 %v1156_v15 }
  0x45   : > { %527 = vperm.xlu0 %1070, %v1280_v8  }
  0x46   : > { %1062 = vset.pattern.permute.xlu1 %v1151_v10  ;;  %v1379_v10 = vsub.s32 3, %v1336_v34 }
  0x47   : > { %431 = vperm.xlu1 %1062, %v1280_v8  }
  0x49   : > { %1073 = vset.pattern.permute.xlu0 %v1160_v20 }
  0x4a   : > { %739 = vperm.xlu0 %1073, %v1275_v7  }
  0x4b   : > { %1063 = vset.pattern.permute.xlu1 %v1161_v21 }
  0x4c   : > { %619 = vperm.xlu1 %1063, %v1275_v7  }
  0x4e   : > { %1076 = vset.pattern.permute.xlu0 %v1161_v21 }
  0x4f   : > { %623 = vperm.xlu0 %1076, %v1280_v8  }
  0x50   : > { %1065 = vset.pattern.permute.xlu1 %v1162_v22 }
  0x51   : > { %643 = vperm.xlu1 %1065, %v1275_v7  }
  0x53   : > { %1078 = vset.pattern.permute.xlu0 %v1162_v22 }
  0x54   : > { %647 = vperm.xlu0 %1078, %v1280_v8  }
  0x55   : > { %1066 = vset.pattern.permute.xlu1 %v1154_v13 }
  0x56   : > { %479 = vperm.xlu1 %1066, %v1280_v8  }
  0x58   : > { %1081 = vset.pattern.permute.xlu0 %v1163_v23 }
  0x59   : > { %719 = vperm.xlu0 %1081, %v1280_v8  }
  0x5a   : > { %1068 = vset.pattern.permute.xlu1 %v1153_v12 }
  0x5b   : > { %503 = vperm.xlu1 %1068, %v1280_v8  }
  0x5d   : > { %1084 = vset.pattern.permute.xlu0 %v1150_v3 }
  0x5f   : > { %1069 = vset.pattern.permute.xlu1 %v1164_v24 }
  0x60   : > { %691 = vperm.xlu1 %1069, %v1275_v7  }
  0x64   : > { %1071 = vset.pattern.permute.xlu1 %v1163_v23 }
  0x65   : > { %715 = vperm.xlu1 %1071, %v1275_v7  }
  0x69   : > { %1072 = vset.pattern.permute.xlu1 %v1158_v17 }
  0x6a   : > { %551 = vperm.xlu1 %1072, %v1280_v8  }
  0x6e   : > { %1074 = vset.pattern.permute.xlu1 %v1155_v14 }
  0x6f   : > { %575 = vperm.xlu1 %1074, %v1280_v8  }
  0x73   : > { %1075 = vset.pattern.permute.xlu1 %v1157_v16  ;;  %v1390_v16 = vsub.s32 4, %v1336_v34 }
  0x74   : > { %599 = vperm.xlu1 %1075, %v1280_v8  }
  0x78   : > { %1077 = vset.pattern.permute.xlu1 %v1150_v3 }
  0x79   : > { %768 = vperm.xlu1 %1077, %v290_v25  }
  0x7d   : > { %775 = vperm.xlu1 %1077, %v292_v26  }
  0x81   : > { %1079 = vset.pattern.permute.xlu1 %v1159_v19 }
  0x82   : > { %671 = vperm.xlu1 %1079, %v1280_v8  }
  0x86   : > { %1080 = vset.pattern.permute.xlu1 %v1164_v24 }
  0x87   : > { %695 = vperm.xlu1 %1080, %v1280_v8  }
  0x8b   : > { %1082 = vset.pattern.permute.xlu1 %v1160_v20 }
  0x8c   : > { %743 = vperm.xlu1 %1082, %v1280_v8  }
  0x90   : > { %1083 = vset.pattern.permute.xlu1 %v1150_v3 }
  0x91   : > { %v323_v28 = vpop.permute.xlu1 %322  ;;  %830 = vperm.xlu1 %1083, %v291_v27   ;;  %v299_v35 = vpop.permute.xlu0 %298 }
  0x92   : > { %v340_v47 = vmul.f32 %v333_v41, %v323_v28  ;;  %v341_v48 = vmul.f32 %v337_v42, %v323_v28  ;;  %v317_v49 = vmul.f32 %v310_v43, %v299_v35  ;;  %v318_v50 = vmul.f32 %v314_v44, %v299_v35 }
  0x94   : > { %v344_v53 = vadd.f32 %v340_v47, %v317_v49  ;;  %v345_v54 = vadd.f32 %v341_v48, %v318_v50 }
  0x95   : > { %v327_v29 = vpop.permute.xlu1 %326  ;;  %v304_v46 = vpop.permute.xlu0 %303 }
  0x96   : > { %v342_v21 = vmul.f32 %v333_v41, %v327_v29  ;;  %v343_v22 = vmul.f32 %v337_v42, %v327_v29  ;;  %v319_v26 = vmul.f32 %v310_v43, %v304_v46  ;;  %v320_v27 = vmul.f32 %v314_v44, %v304_v46 }
  0x97   : > { %v1411_v42 = vsub.s32 5, %v1336_v34 }
  0x98   : > { %v346_v44 = vadd.f32 %v342_v21, %v319_v26  ;;  %v347_v46 = vadd.f32 %v343_v22, %v320_v27 }
  0x99   : > { %v351_v52 = vpop.permute.xlu0 %350 }
  0x9a   : > { %v1331_v30 = vpop.permute.xlu1 %355  ;;  %v358_v55 = vadd.f32 %v351_v52, %v344_v53  ;;  %v359_v56 = vadd.f32 %v351_v52, %v345_v54  ;;  %v1416_v52 = vsub.s32 6, %v1336_v34  ;;  %v1419_v54 = vsub.s32 7, %v1336_v34 }
  0x9c   : > { %v362_v59 = vmax.f32 %v358_v55, 0.0  ;;  %v363_v60 = vmax.f32 %v359_v56, 0.0 }
  0x9d   : > { %v369_v58 = vpop.permute.xlu0 %368 }
  0x9e   : > { %v1333_v31 = vpop.permute.xlu1 %373  ;;  %v1358_v62 = vrot.slane %v362_v59, %v1342_v37  ;;  %v1361_v63 = vrot.slane %v363_v60, %v1342_v37  ;;  %v1371_v5 = vrot.slane %v362_v59, %v1345_v38  ;;  %v1374_v6 = vrot.slane %v363_v60, %v1345_v38 }
  0x9f   : > { %v1384_v14 = vrot.slane %v362_v59, %v1366_v2  ;;  %v1387_v15 = vrot.slane %v363_v60, %v1366_v2  ;;  %v1395_v23 = vrot.slane %v362_v59, %v1379_v10  ;;  %v1398_v24 = vrot.slane %v363_v60, %v1379_v10 }
  0xa0   : > { %v384_v3 = vmul.f32 %v1358_v62, %v369_v58  ;;  %v385_v4 = vmul.f32 %v1361_v63, %v369_v58  ;;  %v1406_v35 = vrot.slane %v363_v60, %v1390_v16  ;;  %v1425_v55 = vrot.slane %v363_v60, %v1411_v42 }
  0xa1   : > { %v391_v0 = vpop.permute.xlu0 %390  ;;  %v360_v58 = vadd.f32 %v1331_v30, %v346_v44 }
  0xa2   : > { %v398_v12 = vadd.f32 %v391_v0, %v384_v3  ;;  %v399_v13 = vadd.f32 %v391_v0, %v385_v4  ;;  %v361_v0 = vadd.f32 %v1331_v30, %v347_v46 }
  0xa3   : > { %v404_v33 = vpop.permute.xlu1 %403  ;;  %v1449_v21 = vmax.f32 %v360_v58, 0.0 }
  0xa4   : > { %v418_v7 = vmul.f32 %v1371_v5, %v404_v33  ;;  %v419_v8 = vmul.f32 %v1374_v6, %v404_v33  ;;  %v1403_v33 = vrot.slane %v362_v59, %v1390_v16  ;;  %v1451_v22 = vmax.f32 %v361_v0, 0.0 }
  0xa5   : > { %v1471_v44 = vrot.slane %v1449_v21, %v1345_v38 }
  0xa6   : > { %v428_v9 = vpop.permute.xlu0 %427  ;;  %v422_v17 = vadd.f32 %v418_v7, %v398_v12  ;;  %v423_v18 = vadd.f32 %v419_v8, %v399_v13  ;;  %v1432_v7 = vrot.slane %v362_v59, %v1416_v52  ;;  %v1435_v8 = vrot.slane %v363_v60, %v1416_v52 }
  0xa7   : > { %v442_v19 = vmul.f32 %v1384_v14, %v428_v9  ;;  %v443_v20 = vmul.f32 %v1387_v15, %v428_v9  ;;  %v1440_v12 = vrot.slane %v362_v59, %v1419_v54  ;;  %v1443_v13 = vrot.slane %v363_v60, %v1419_v54 }
  0xa8   : > { %v452_v36 = vpop.permute.xlu1 %451  ;;  %v1475_v46 = vrot.slane %v1451_v22, %v1345_v38  ;;  %v1491_v58 = vrot.slane %v1451_v22, %v1379_v10 }
  0xa9   : > { %v446_v39 = vadd.f32 %v442_v19, %v422_v17  ;;  %v447_v40 = vadd.f32 %v443_v20, %v423_v18  ;;  %v466_v29 = vmul.f32 %v1395_v23, %v452_v36  ;;  %v467_v41 = vmul.f32 %v1398_v24, %v452_v36 }
  0xaa   : > { %v1422_v36 = vrot.slane %v362_v59, %v1411_v42 }
  0xab   : > { %v500_v28 = vpop.permute.xlu0 %499  ;;  %v470_v49 = vadd.f32 %v466_v29, %v446_v39  ;;  %v471_v50 = vadd.f32 %v467_v41, %v447_v40  ;;  %v1461_v39 = vrot.slane %v1449_v21, %v1342_v37 }
  0xac   : > { %v514_v3 = vmul.f32 %v1422_v36, %v500_v28  ;;  %v515_v4 = vmul.f32 %v1425_v55, %v500_v28 }
  0xad   : > { %v476_v45 = vpop.permute.xlu1 %475 }
  0xae   : > { %v490_v47 = vmul.f32 %v1403_v33, %v476_v45  ;;  %v491_v43 = vmul.f32 %v1406_v35, %v476_v45 }
  0xb0   : > { %v572_v53 = vpop.permute.xlu0 %571  ;;  %v494_v56 = vadd.f32 %v490_v47, %v470_v49  ;;  %v495_v45 = vadd.f32 %v491_v43, %v471_v50 }
  0xb1   : > { %v586_v47 = vmul.f32 %v1461_v39, %v572_v53 }
  0xb2   : > { %v1351_v51 = vpop.permute.xlu1 %523  ;;  %v518_v17 = vadd.f32 %v514_v3, %v494_v56  ;;  %v519_v30 = vadd.f32 %v515_v4, %v495_v45  ;;  %v1479_v56 = vrot.slane %v1449_v21, %v1366_v2  ;;  %v1483_v45 = vrot.slane %v1451_v22, %v1366_v2 }
  0xb3   : > { %v538_v18 = vmul.f32 %v1432_v7, %v1351_v51  ;;  %v539_v19 = vmul.f32 %v1435_v8, %v1351_v51  ;;  %v1465_v51 = vrot.slane %v1451_v22, %v1342_v37  ;;  %v386_v2 = vmul.f32 %v1358_v62, %v1333_v31 }
  0xb5   : > { %v596_v20 = vpop.permute.xlu0 %595  ;;  %v542_v27 = vadd.f32 %v538_v18, %v518_v17  ;;  %v543_v28 = vadd.f32 %v539_v19, %v519_v30  ;;  %v587_v43 = vmul.f32 %v1465_v51, %v572_v53  ;;  %v1487_v53 = vrot.slane %v1449_v21, %v1379_v10 }
  0xb6   : > { %v610_v38 = vmul.f32 %v1471_v44, %v596_v20  ;;  %v611_v0 = vmul.f32 %v1475_v46, %v596_v20  ;;  %v387_v17 = vmul.f32 %v1361_v63, %v1333_v31 }
  0xb7   : > { %v1353_v57 = vpop.permute.xlu1 %547 }
  0xb8   : > { %v562_v59 = vmul.f32 %v1440_v12, %v1353_v57  ;;  %v563_v60 = vmul.f32 %v1443_v13, %v1353_v57 }
  0xba   : > { %v566_v40 = vadd.f32 %v562_v59, %v542_v27  ;;  %v567_v29 = vadd.f32 %v563_v60, %v543_v28  ;;  %v456_v41 = vpop.permute.xlu0 %455 }
  0xbc   : > { %v1355_v61 = vpop.permute.xlu1 %395  ;;  %v590_v49 = vadd.f32 %v586_v47, %v566_v40  ;;  %v591_v50 = vadd.f32 %v587_v43, %v567_v29 }
  0xbd   : > { %v400_v27 = vadd.f32 %v1355_v61, %v386_v2  ;;  %v401_v62 = vadd.f32 %v1355_v61, %v387_v17  ;;  %v469_v2 = vmul.f32 %v1398_v24, %v456_v41 }
  0xbe   : > { %v614_v20 = vadd.f32 %v610_v38, %v590_v49  ;;  %v615_v59 = vadd.f32 %v611_v0, %v591_v50  ;;  %v1537_v50 = vrot.slane %v1451_v22, %v1416_v52 }
  0xbf   : > { %v668_v30 = vpop.permute.xlu0 %667 }
  0xc1   : > { %v1363_v1 = vpop.permute.xlu1 %407 }
  0xc2   : > { %v420_v10 = vmul.f32 %v1371_v5, %v1363_v1  ;;  %v421_v18 = vmul.f32 %v1374_v6, %v1363_v1  ;;  %v1517_v1 = vrot.slane %v1449_v21, %v1390_v16  ;;  %v1521_v6 = vrot.slane %v1451_v22, %v1390_v16 }
  0xc3   : > { %v1533_v16 = vrot.slane %v1449_v21, %v1416_v52 }
  0xc4   : > { %v425_v40 = vadd.f32 %v421_v18, %v401_v62  ;;  %v528_v47 = vpop.permute.xlu0 %527  ;;  %v682_v38 = vmul.f32 %v1517_v1, %v668_v30  ;;  %v683_v0 = vmul.f32 %v1521_v6, %v668_v30 }
  0xc6   : > { %v1381_v11 = vpop.permute.xlu1 %431 }
  0xc7   : > { %v444_v31 = vmul.f32 %v1384_v14, %v1381_v11  ;;  %v445_v63 = vmul.f32 %v1387_v15, %v1381_v11  ;;  %v1525_v14 = vrot.slane %v1449_v21, %v1411_v42  ;;  %v1529_v11 = vrot.slane %v1451_v22, %v1411_v42 }
  0xc9   : > { %v449_v49 = vadd.f32 %v445_v63, %v425_v40 }
  0xcb   : > { %v1400_v25 = vpop.permute.xlu1 %619 }
  0xcc   : > { %v634_v3 = vmul.f32 %v1479_v56, %v1400_v25  ;;  %v635_v4 = vmul.f32 %v1483_v45, %v1400_v25 }
  0xce   : > { %v638_v5 = vadd.f32 %v634_v3, %v614_v20  ;;  %v639_v28 = vadd.f32 %v635_v4, %v615_v59  ;;  %v468_v4 = vmul.f32 %v1395_v23, %v456_v41 }
  0xd0   : > { %v644_v48 = vpop.permute.xlu1 %643 }
  0xd1   : > { %v658_v60 = vmul.f32 %v1487_v53, %v644_v48  ;;  %v659_v25 = vmul.f32 %v1491_v58, %v644_v48  ;;  %v424_v48 = vadd.f32 %v420_v10, %v400_v27 }
  0xd3   : > { %v662_v29 = vadd.f32 %v658_v60, %v638_v5  ;;  %v663_v61 = vadd.f32 %v659_v25, %v639_v28  ;;  %v448_v43 = vadd.f32 %v444_v31, %v424_v48  ;;  %v473_v60 = vadd.f32 %v469_v2, %v449_v49  ;;  %v740_v25 = vpop.permute.xlu0 %739 }
  0xd4   : > { %v540_v28 = vmul.f32 %v1432_v7, %v528_v47  ;;  %v541_v48 = vmul.f32 %v1435_v8, %v528_v47 }
  0xd5   : > { %v1437_v9 = vpop.permute.xlu1 %479  ;;  %v686_v52 = vadd.f32 %v682_v38, %v662_v29  ;;  %v687_v18 = vadd.f32 %v683_v0, %v663_v61  ;;  %v472_v59 = vadd.f32 %v468_v4, %v448_v43 }
  0xd6   : > { %v492_v17 = vmul.f32 %v1403_v33, %v1437_v9  ;;  %v493_v10 = vmul.f32 %v1406_v35, %v1437_v9  ;;  %v1557_v9 = vrot.slane %v1449_v21, %v1419_v54 }
  0xd7   : > { %v624_v8 = vpop.permute.xlu0 %623 }
  0xd8   : > { %v496_v27 = vadd.f32 %v492_v17, %v472_v59  ;;  %v497_v35 = vadd.f32 %v493_v10, %v473_v60 }
  0xda   : > { %v1457_v26 = vpop.permute.xlu1 %503 }
  0xdb   : > { %v517_v23 = vmul.f32 %v1425_v55, %v1457_v26  ;;  %v754_v55 = vmul.f32 %v1557_v9, %v740_v25 }
  0xdd   : > { %v521_v63 = vadd.f32 %v517_v23, %v497_v35 }
  0xdf   : > { %v692_v57 = vpop.permute.xlu1 %691  ;;  %v545_v61 = vadd.f32 %v541_v48, %v521_v63 }
  0xe0   : > { %v706_v3 = vmul.f32 %v1525_v14, %v692_v57  ;;  %v707_v42 = vmul.f32 %v1529_v11, %v692_v57  ;;  %v516_v57 = vmul.f32 %v1422_v36, %v1457_v26 }
  0xe2   : > { %v710_v41 = vadd.f32 %v706_v3, %v686_v52  ;;  %v711_v33 = vadd.f32 %v707_v42, %v687_v18  ;;  %v520_v36 = vadd.f32 %v516_v57, %v496_v27  ;;  %v636_v52 = vmul.f32 %v1479_v56, %v624_v8 }
  0xe4   : > { %v716_v19 = vpop.permute.xlu1 %715 }
  0xe5   : > { %v730_v20 = vmul.f32 %v1533_v16, %v716_v19  ;;  %v731_v30 = vmul.f32 %v1537_v50, %v716_v19  ;;  %v1561_v19 = vrot.slane %v1451_v22, %v1419_v54  ;;  %v544_v22 = vadd.f32 %v540_v28, %v520_v36 }
  0xe7   : > { %v734_v62 = vadd.f32 %v730_v20, %v710_v41  ;;  %v735_v31 = vadd.f32 %v731_v30, %v711_v33  ;;  %v755_v26 = vmul.f32 %v1561_v19, %v740_v25 }
  0xe9   : > { %v552_v15 = vpop.permute.xlu1 %551  ;;  %v758_v29 = vadd.f32 %v754_v55, %v734_v62  ;;  %v759_v54 = vadd.f32 %v755_v26, %v735_v31 }
  0xea   : > { %v564_v21 = vmul.f32 %v1440_v12, %v552_v15  ;;  %v565_v40 = vmul.f32 %v1443_v13, %v552_v15 }
  0xeb   : > { %v762_v47 = vmax.f32 %v758_v29, 0.0  ;;  %v763_v12 = vmax.f32 %v759_v54, 0.0 }
  0xec   : > { %v568_v38 = vadd.f32 %v564_v21, %v544_v22  ;;  %v569_v0 = vadd.f32 %v565_v40, %v545_v61 }
  0xee   : > { %v576_v24 = vpop.permute.xlu1 %575 }
  0xef   : > { %v588_v43 = vmul.f32 %v1461_v39, %v576_v24  ;;  %v589_v49 = vmul.f32 %v1465_v51, %v576_v24 }
  0xf1   : > { %v592_v4 = vadd.f32 %v588_v43, %v568_v38  ;;  %v593_v13 = vadd.f32 %v589_v49, %v569_v0 }
  0xf3   : > { %v600_v5 = vpop.permute.xlu1 %599 }
  0xf4   : > { %v612_v3 = vmul.f32 %v1471_v44, %v600_v5  ;;  %v613_v7 = vmul.f32 %v1475_v46, %v600_v5  ;;  %v637_v44 = vmul.f32 %v1483_v45, %v624_v8  ;;  %v648_v46 = vpop.permute.xlu0 %647 }
  0xf5   : > { %v660_v45 = vmul.f32 %v1487_v53, %v648_v46  ;;  %v661_v33 = vmul.f32 %v1491_v58, %v648_v46 }
  0xf6   : > { %v616_v17 = vadd.f32 %v612_v3, %v592_v4  ;;  %v617_v39 = vadd.f32 %v613_v7, %v593_v13 }
  0xf8   : > { %v769_v42 = vpop.permute.xlu1 %768  ;;  %v640_v60 = vadd.f32 %v636_v52, %v616_v17  ;;  %v641_v57 = vadd.f32 %v637_v44, %v617_v39  ;;  %v720_v48 = vpop.permute.xlu0 %719 }
  0xf9   : > { %v1573_v15 = vmul.f32 %v769_v42, %v762_v47  ;;  %v1575_v2 = vmul.f32 %v769_v42, %v763_v12  ;;  %v732_v43 = vmul.f32 %v1533_v16, %v720_v48  ;;  %v733_v49 = vmul.f32 %v1537_v50, %v720_v48 }
  0xfa   : > { %v664_v63 = vadd.f32 %v660_v45, %v640_v60  ;;  %v665_v55 = vadd.f32 %v661_v33, %v641_v57  ;;  %v1165_v45 = vmov 1966171168  }
  0xfb   : > { %v786_v30 = vrot.slane %v1573_v15, 1  ;;  %v787_v59 = vrot.slane %v1575_v2, 1  ;;  %v792_v41 = vrot.slane %v1573_v15, 2  ;;  %v798_v31 = vrot.slane %v1573_v15, 3 }
  0xfc   : > { %v776_v10 = vpop.permute.xlu1 %775  ;;  %v799_v36 = vrot.slane %v1575_v2, 3  ;;  %v804_v28 = vrot.slane %v1573_v15, 4  ;;  %v805_v53 = vrot.slane %v1575_v2, 4  ;;  %v810_v22 = vrot.slane %v1573_v15, 5 }
  0xfd   : > { %v781_v51 = vrot.slane %v776_v10, %v1342_v37  ;;  %v793_v37 = vrot.slane %v1575_v2, 2  ;;  %v811_v61 = vrot.slane %v1575_v2, 5  ;;  %v816_v12 = vrot.slane %v1573_v15, 6 }
  0xfe   : > { %v822_v50 = vrot.slane %v1573_v15, 7  ;;  %v823_v10 = vrot.slane %v1575_v2, 7  ;;  %v885_v33 = vunpack.c.l.s4 %v1165_v45 }
  0xff   : > { %v782_v18 = vadd.f32 %v781_v51, %v1573_v15  ;;  %v783_v20 = vadd.f32 %v781_v51, %v1575_v2 }
 0x101   : > { %v790_v23 = vadd.f32 %v786_v30, %v782_v18  ;;  %v791_v24 = vadd.f32 %v787_v59, %v783_v20  ;;  %v672_v56 = vpop.permute.xlu1 %671 }
 0x102   : > { %v684_v25 = vmul.f32 %v1517_v1, %v672_v56  ;;  %v685_v27 = vmul.f32 %v1521_v6, %v672_v56 }
 0x103   : > { %v796_v35 = vadd.f32 %v792_v41, %v790_v23  ;;  %v797_v62 = vadd.f32 %v793_v37, %v791_v24 }
 0x104   : > { %v688_v58 = vadd.f32 %v684_v25, %v664_v63  ;;  %v689_v21 = vadd.f32 %v685_v27, %v665_v55 }
 0x105   : > { %v802_v26 = vadd.f32 %v798_v31, %v796_v35  ;;  %v803_v5 = vadd.f32 %v799_v36, %v797_v62 }
 0x106   : > { %v696_v1 = vpop.permute.xlu1 %695 }
 0x107   : > { %v808_v40 = vadd.f32 %v804_v28, %v802_v26  ;;  %v809_v6 = vadd.f32 %v805_v53, %v803_v5  ;;  %v708_v29 = vmul.f32 %v1525_v14, %v696_v1  ;;  %v709_v54 = vmul.f32 %v1529_v11, %v696_v1 }
 0x108   : > { %v817_v14 = vrot.slane %v1575_v2, 6  ;;  %v886_v26 = vunpack.c.0.s8 %v885_v33 }
 0x109   : > { %v712_v38 = vadd.f32 %v708_v29, %v688_v58  ;;  %v713_v0 = vadd.f32 %v709_v54, %v689_v21  ;;  %v814_v3 = vadd.f32 %v810_v22, %v808_v40  ;;  %v815_v7 = vadd.f32 %v811_v61, %v809_v6 }
 0x10a   : > { %v889_v54 = vsub.s32 %v886_v26, %v1336_v34 }
 0x10b   : > { %v744_v42 = vpop.permute.xlu1 %743  ;;  %v736_v8 = vadd.f32 %v732_v43, %v712_v38  ;;  %v737_v47 = vadd.f32 %v733_v49, %v713_v0  ;;  %v820_v13 = vadd.f32 %v816_v12, %v814_v3  ;;  %v821_v17 = vadd.f32 %v817_v14, %v815_v7 }
 0x10c   : > { %v756_v11 = vmul.f32 %v1557_v9, %v744_v42  ;;  %v757_v4 = vmul.f32 %v1561_v19, %v744_v42 }
 0x10d   : > { %v826_v46 = vadd.f32 %v822_v50, %v820_v13  ;;  %v827_v18 = vadd.f32 %v823_v10, %v821_v17 }
 0x10e   : > { %v760_v16 = vadd.f32 %v756_v11, %v736_v8  ;;  %v761_v39 = vadd.f32 %v757_v4, %v737_v47 }
 0x110   : > { %v831_v51 = vpop.permute.xlu1 %830  ;;  %v764_v52 = vmax.f32 %v760_v16, 0.0  ;;  %v765_v44 = vmax.f32 %v761_v39, 0.0 }
 0x112   : > { %v833_v20 = vmul.f32 %v831_v51, %v764_v52  ;;  %v834_v30 = vmul.f32 %v831_v51, %v765_v44 }
 0x114   : > { %v835_v59 = vadd.f32 %v833_v20, %v826_v46  ;;  %v836_v60 = vadd.f32 %v834_v30, %v827_v18  ;;  %v839_v9 = vrot.slane %v833_v20, 1  ;;  %v840_v19 = vrot.slane %v834_v30, 1 }
 0x115   : > { %v845_v24 = vrot.slane %v833_v20, 2  ;;  %v846_v41 = vrot.slane %v834_v30, 2  ;;  %v851_v56 = vrot.slane %v833_v20, 3  ;;  %v852_v2 = vrot.slane %v834_v30, 3 }
 0x116   : > { %v843_v57 = vadd.f32 %v839_v9, %v835_v59  ;;  %v844_v23 = vadd.f32 %v840_v19, %v836_v60  ;;  %v857_v35 = vrot.slane %v833_v20, 4  ;;  %v858_v62 = vrot.slane %v834_v30, 4 }
 0x117   : > { %v863_v63 = vrot.slane %v833_v20, 5  ;;  %v864_v55 = vrot.slane %v834_v30, 5  ;;  %v869_v53 = vrot.slane %v833_v20, 6  ;;  %v870_v48 = vrot.slane %v834_v30, 6 }
 0x118   : > { %v849_v37 = vadd.f32 %v845_v24, %v843_v57  ;;  %v850_v15 = vadd.f32 %v846_v41, %v844_v23  ;;  %v875_v1 = vrot.slane %v833_v20, 7  ;;  %v876_v40 = vrot.slane %v834_v30, 7 }
 0x11a   : > { %v855_v25 = vadd.f32 %v851_v56, %v849_v37  ;;  %v856_v27 = vadd.f32 %v852_v2, %v850_v15 }
 0x11c   : > { %v861_v31 = vadd.f32 %v857_v35, %v855_v25  ;;  %v862_v36 = vadd.f32 %v858_v62, %v856_v27 }
 0x11e   : > { %v867_v5 = vadd.f32 %v863_v63, %v861_v31  ;;  %v868_v28 = vadd.f32 %v864_v55, %v862_v36 }
 0x120   : > { %v873_v58 = vadd.f32 %v869_v53, %v867_v5  ;;  %v874_v21 = vadd.f32 %v870_v48, %v868_v28 }
 0x122   : > { %v879_v6 = vadd.f32 %v875_v1, %v873_v58  ;;  %v880_v29 = vadd.f32 %v876_v40, %v874_v21 }
 0x124   : > { %v883_v22 = vcombine.low %v879_v6, %v880_v29 }
 0x126   : > { %v890_v61 = vrot.slane %v883_v22, %v889_v54 }
 0x128   : > { %v897_v43 = vrot.slane %v890_v61, %v889_v54 }
 0x12a   : > { %903 = vst.msk [vmem:[%s274_s9] sm:$0x3] %vm901_vm0, %v897_v43 }
 0x12b   : > { %1098 = shalt.err (!%p1095_p3)
}
 0x12c   : > { %s1099_s21 = scalar_lea.hbm %s1613_s16, 32  ;;  %s1103_s24 = scalar_lea.hbm %s1662_s7, 64 }
 0x12d   : > { %p1100_p4 = scmp.ne.s32.totalorder %s1613_s16, %s1099_s21  ;;  %p1104_p9 = scmp.lt.u32.totalorder %s1613_s16, %s1662_s7 }
 0x12e   : > { %p1105_p10 = scmp.lt.u32.totalorder %s1103_s24, %s1099_s21  ;;  %p1107_p12 = scmp.lt.u32.totalorder %s1099_s21, %s1613_s16 }
 0x12f   : > { %p1101_p7 = pnand %p1100_p4, %p1248_p5 }
 0x130   : > { %p1106_p11 = por %p1105_p10, %p1104_p9 }
 0x131   : > { %p1102_p8 = pneg %p1101_p7 }
 0x132   : > { %p1108_p13 = por %p1107_p12, %p1106_p11 }
 0x134   : > { %p1109_p0 = pnand %p1108_p13, %p1102_p8 }
 0x136   : > { %1112 = shalt.err (!%p1109_p0)
}
 0x137   : > { %992 = dma.vmem_to_hbm [thread:$0]  (%p1248_p5), %s1615_s10, 32, %s1613_s16, %s905_s17  }
 0x138 PF: > { %p998_p1 = scmp.ge.s32.totalorder %s1147_s29, 2  ;;  %s931_s9 = sand.u32 1, %s1135_s26  }
 0x139   : > { %s932_s14 = scalar_lea.sflag [#allocation4], %s931_s9 }
 0x13a   : > { %p995_p2 = pnand %p998_p1, %p1252_p6 }
 0x13c   : > { %1130 = dma.done.wait (!%p995_p2), %s932_s14, 32  }
 0x13d   : > { %1132 = vsyncadd (!%p995_p2), %s932_s14, 4294967264  ;;  %p19_p3 = scmp.ge.s32.totalorder %s1235_s8, 4   ;;  %s1665_s26 = smov %s1139_s27 }
 0x13e   : > { %s1666_s27 = smov %s1143_s28  ;;  %s1667_s28 = smov %s1246_s11 }
 0x13f   : > { %s1668_s29 = smov %s1235_s8  ;;  %21 = sbr.rel (!%p19_p3) target bundleno = 6 (0x6), region = 84 }
 0x146   :  { %937 = vsyncpa [#allocation4], 1 }
 0x147   :  { %939 = vsyncpa [#allocation4 + $0x1], 1 }

</bundles_post_ra>
